<compile_context>
chip_gen: v7x
topology: tpu7x:2x2x1
jax: 0.10.0
libtpu: 0.0.40
codegen_flags: <defaults>
</compile_context>

<pallas_src>
import functools

import jax
import jax.numpy as jnp
from jax.experimental import pallas as pl
from jax.experimental.pallas import tpu as pltpu

_NEG = jnp.float32(-1e30)   # finite "minus infinity" for padded vocab rows
_MAX_TN = 2048              # max token rows per tile (multiple of 128)


def _round_up(x, m):
    return ((x + m - 1) // m) * m


def _choose_tiles(n):
    """Pick the token tile TN (multiple of 128), padded length Np and grid G."""
    tn = min(_MAX_TN, _round_up(max(n, 1), 128))
    # When the whole problem fits in <= 2 max-size tiles, split it into two so
    # the "parallel" grid axis feeds both of v7x's TensorCores (harmless on the
    # single-core v5e/v6e beyond slightly smaller tiles).
    if tn > 128 and _round_up(n, 128) <= 2 * _MAX_TN:
        tn = max(128, _round_up(-(-n // 2), 128))
    np_ = _round_up(n, tn)
    return tn, np_, np_ // tn


def _bigram_logits_kernel(idx_ref, embT_ref, logits_ref):
    """Embedding lookup as one-hot @ table on the MXU (inference path).

    idx_ref:    (1, TN)   lane-dense token ids for this tile
    embT_ref:   (Vp, Vp)  transposed, padded embedding table (grid-resident)
    logits_ref: (TN, Vp)  logits tile (lane-dense store)
    """
    vp = embT_ref.shape[0]
    tn = idx_ref.shape[1]
    idx = idx_ref[...]                                         # (1, TN)
    vrow = jax.lax.broadcasted_iota(jnp.int32, (vp, tn), 0)    # (Vp, TN)
    onehot_t = (vrow == idx).astype(jnp.float32)               # (Vp, TN)
    # logits_t[v, r] = embT[v, idx[r]] = emb[idx[r], v]
    logits_t = jnp.dot(embT_ref[...], onehot_t,
                       preferred_element_type=jnp.float32)     # (Vp, TN)
    logits_ref[...] = jnp.transpose(logits_t)                  # (TN, Vp)


def _bigram_loss_kernel(idx_ref, tgt_ref, embT_ref, logits_ref, nll_ref,
                        *, n_tokens):
    """Embedding lookup + fused cross-entropy; emits one NLL partial sum per tile."""
    vp = embT_ref.shape[0]
    tn = idx_ref.shape[1]
    idx = idx_ref[...]                                         # (1, TN)
    tgt = tgt_ref[...]                                         # (1, TN)
    vrow = jax.lax.broadcasted_iota(jnp.int32, (vp, tn), 0)    # (Vp, TN)

    onehot_t = (vrow == idx).astype(jnp.float32)               # (Vp, TN)
    logits_t = jnp.dot(embT_ref[...], onehot_t,
                       preferred_element_type=jnp.float32)     # (Vp, TN)
    logits = jnp.transpose(logits_t)                           # (TN, Vp)
    logits_ref[...] = logits

    # log-softmax cross-entropy; reductions over the lane (vocab) axis.
    m = jnp.max(logits, axis=-1, keepdims=True)                # (TN, 1)
    lse = jnp.log(jnp.sum(jnp.exp(logits - m), axis=-1, keepdims=True)) + m
    onehot_tgt = jnp.transpose((vrow == tgt).astype(jnp.float32))   # (TN, Vp)
    tgt_logit = jnp.sum(logits * onehot_tgt, axis=-1, keepdims=True)
    nll = lse - tgt_logit                                      # (TN, 1)

    # Mask rows whose global token index lands in the padding and fold the
    # tile into one partial sum; the wrapper sums G of these and scales by 1/N.
    row = jax.lax.broadcasted_iota(jnp.int32, (tn, 1), 0)      # (TN, 1)
    valid = (pl.program_id(0) * tn + row) < n_tokens
    partial = jnp.sum(jnp.where(valid, nll, 0.0))              # scalar
    nll_ref[...] = jnp.broadcast_to(partial, (1, 1))


def bigram_forward(idx, emb_table, target=None):
    """JAX/Pallas equivalent of BigramModel.forward.

    idx:       (B, T) int32 token ids in [0, V)
    emb_table: (V, V) float32 embedding table
    target:    optional (B, T) int32 token ids

    Returns (logits, loss):
      target is None -> logits shape (B, T, V), loss None
      else           -> logits shape (B*T, V),  loss scalar float32 (mean NLL)
    """
    B, T = idx.shape
    V = emb_table.shape[0]
    N = B * T

    Vp = _round_up(max(V, 128), 128)
    TN, Np, G = _choose_tiles(N)

    # Transposed, padded table: embT[v, c] = emb[c, v].
    #   * token-id columns [:, V:) stay zero (dead lanes of the one-hot
    #     contraction -- ids are always < V),
    #   * padded vocab rows [V:, :] get a finite -1e30 so logsumexp ignores
    #     them without NaN risk; those logits columns are sliced off below.
    embT = jnp.zeros((Vp, Vp), jnp.float32)
    embT = embT.at[:V, :V].set(jnp.transpose(emb_table.astype(jnp.float32)))
    if Vp > V:
        embT = embT.at[V:, :].set(_NEG)

    # Lane-dense token ids: one (1, TN) row per grid step.
    idx_rows = jnp.zeros((Np,), jnp.int32).at[:N].set(
        idx.reshape(N).astype(jnp.int32)).reshape(G, TN)

    cparams = pltpu.CompilerParams(
        dimension_semantics=("parallel",),
        vmem_limit_bytes=32 * 1024 * 1024)
    idx_spec = pl.BlockSpec((1, TN), lambda i: (i, 0))
    emb_spec = pl.BlockSpec((Vp, Vp), lambda i: (0, 0))
    logits_spec = pl.BlockSpec((TN, Vp), lambda i: (i, 0))

    if target is None:
        # Inference path: logits only, no cross-entropy work at all.
        logits_pad = pl.pallas_call(
            _bigram_logits_kernel,
            out_shape=jax.ShapeDtypeStruct((Np, Vp), jnp.float32),
            grid=(G,),
            in_specs=[idx_spec, emb_spec],
            out_specs=logits_spec,
            compiler_params=cparams,
        )(idx_rows, embT)
        return logits_pad[:N, :V].reshape(B, T, V), None

    tgt_rows = jnp.zeros((Np,), jnp.int32).at[:N].set(
        target.reshape(N).astype(jnp.int32)).reshape(G, TN)

    logits_pad, nll_part = pl.pallas_call(
        functools.partial(_bigram_loss_kernel, n_tokens=N),
        out_shape=(
            jax.ShapeDtypeStruct((Np, Vp), jnp.float32),
            jax.ShapeDtypeStruct((G, 1), jnp.float32),
        ),
        grid=(G,),
        in_specs=[idx_spec, idx_spec, emb_spec],
        out_specs=(logits_spec, pl.BlockSpec((1, 1), lambda i: (i, 0))),
        compiler_params=cparams,
    )(idx_rows, tgt_rows, embT)

    loss = jnp.sum(nll_part) * jnp.float32(1.0 / N)
    # BigramModel.forward semantics: logits reshaped to (B*T, V) on the loss path.
    return logits_pad[:N, :V], loss


# TODO(synk): BigramModel.generate (autoregressive multinomial sampling loop)
# is host-side control flow over repeated forward calls; not kernelized here.

if __name__ == "__main__":
    # Deterministic setup. The original builds a ~65-char Shakespeare vocab
    # from input.txt; we fix V=65 in-script to stay self-contained.
    V = 65
    B, T = 2, 8

    key = jax.random.PRNGKey(0)
    k_emb, k_idx, k_tgt, k_idx2, k_tgt2 = jax.random.split(key, 5)

    emb_table = jax.random.normal(k_emb, (V, V), dtype=jnp.float32)
    idx = jax.random.randint(k_idx, (B, T), 0, V, dtype=jnp.int32)
    target = jax.random.randint(k_tgt, (B, T), 0, V, dtype=jnp.int32)

    # Training path: (B*T, V) logits + scalar mean cross-entropy loss.
    logits, loss = bigram_forward(idx, emb_table, target)
    jax.block_until_ready((logits, loss))

    # Inference path: (B, T, V) logits, loss is None (logits-only kernel).
    logits_nt, loss_nt = bigram_forward(idx, emb_table, None)
    jax.block_until_ready(logits_nt)

    # Plain-JAX reference.
    def ref_forward(ii, tt):
        lg = emb_table[ii.reshape(-1)]
        lse = jax.nn.logsumexp(lg, axis=-1)
        nll = lse - jnp.take_along_axis(lg, tt.reshape(-1, 1), axis=-1)[:, 0]
        return lg, jnp.mean(nll)

    ref_logits, ref_loss = ref_forward(idx, target)
    assert logits.shape == (B * T, V)
    assert logits_nt.shape == (B, T, V)
    assert loss_nt is None
    assert jnp.allclose(logits, ref_logits, atol=1e-5)
    assert jnp.allclose(logits_nt.reshape(B * T, V), ref_logits, atol=1e-5)
    assert jnp.allclose(loss, ref_loss, atol=1e-5, rtol=1e-5)

    # Larger case exercising the 2-tile "parallel" grid + padded-lane masking
    # (N=1500 -> TN=768, Np=1536, grid=(2,)).
    B2, T2 = 3, 500
    idx2 = jax.random.randint(k_idx2, (B2, T2), 0, V, dtype=jnp.int32)
    tgt2 = jax.random.randint(k_tgt2, (B2, T2), 0, V, dtype=jnp.int32)
    logits2, loss2 = bigram_forward(idx2, emb_table, tgt2)
    jax.block_until_ready((logits2, loss2))
    ref_logits2, ref_loss2 = ref_forward(idx2, tgt2)
    assert logits2.shape == (B2 * T2, V)
    assert jnp.allclose(logits2, ref_logits2, atol=1e-5)
    assert jnp.allclose(loss2, ref_loss2, atol=1e-5, rtol=1e-5)

    print("KERNEL_OK")
</pallas_src>

<mosaic_0001>
module attributes {stable_mosaic.version = 11 : i64} {
  func.func @_bigram_loss_kernel(%arg0: i32, %arg1: memref<1x128xi32, #tpu.memory_space<vmem>>, %arg2: memref<1x128xi32, #tpu.memory_space<vmem>>, %arg3: memref<128x128xf32, #tpu.memory_space<vmem>>, %arg4: memref<128x128xf32, #tpu.memory_space<vmem>>, %arg5: memref<1x1xf32, #tpu.memory_space<vmem>>) attributes {dimension_semantics = [#tpu.dimension_semantics<parallel>], iteration_bounds = array<i64: 1>, scalar_prefetch = 0 : i64, scratch_operands = 0 : i64, tpu.core_type = #tpu.core_type<tc>, window_params = [{transform_indices = @transform_0, window_bounds = array<i64: 1, 128>}, {transform_indices = @transform_1, window_bounds = array<i64: 1, 128>}, {pipeline_mode = #tpu.pipeline_mode<synchronous>, transform_indices = @transform_2, window_bounds = array<i64: 128, 128>}, {transform_indices = @transform_3, window_bounds = array<i64: 128, 128>}, {transform_indices = @transform_4, window_bounds = array<i64: 1, 1>}]} {
    %c0 = arith.constant 0 : index
    %c0_0 = arith.constant 0 : index
    %0 = vector.load %arg1[%c0, %c0_0] : memref<1x128xi32, #tpu.memory_space<vmem>>, vector<1x128xi32>
    %c0_1 = arith.constant 0 : index
    %c0_2 = arith.constant 0 : index
    %1 = vector.load %arg2[%c0_1, %c0_2] : memref<1x128xi32, #tpu.memory_space<vmem>>, vector<1x128xi32>
    %2 = tpu.iota {dimensions = array<i32: 0>} : vector<128x128xi32>
    %3 = vector.broadcast %0 : vector<1x128xi32> to vector<128x128xi32>
    %4 = arith.cmpi eq, %2, %3 : vector<128x128xi32>
    %5 = arith.extui %4 : vector<128x128xi1> to vector<128x128xi32>
    %6 = arith.sitofp %5 : vector<128x128xi32> to vector<128x128xf32>
    %c0_3 = arith.constant 0 : index
    %c0_4 = arith.constant 0 : index
    %7 = vector.load %arg3[%c0_3, %c0_4] : memref<128x128xf32, #tpu.memory_space<vmem>>, vector<128x128xf32>
    %cst = arith.constant dense<0.000000e+00> : vector<128x128xf32>
    %8 = tpu.matmul %7, %6, %cst {dimension_numbers = #tpu.dot_dimension_numbers<[1], [0], [0], [1], [0, 0, 1, 1], [], []>} : vector<128x128xf32>, vector<128x128xf32>, vector<128x128xf32> -> vector<128x128xf32>
    %9 = tpu.transpose %8, [1, 0] : vector<128x128xf32> -> vector<128x128xf32>
    %c0_5 = arith.constant 0 : index
    %c0_6 = arith.constant 0 : index
    %10 = vector.load %arg4[%c0_5, %c0_6] : memref<128x128xf32, #tpu.memory_space<vmem>>, vector<128x128xf32>
    tpu.vector_store %arg4[%c0_5, %c0_6], %9 {strides = array<i32>} : memref<128x128xf32, #tpu.memory_space<vmem>>, vector<128x128xf32>,
    %cst_7 = arith.constant dense<0xFF800000> : vector<128xf32>
    %11 = vector.multi_reduction <maximumf>, %9, %cst_7 [1] : vector<128x128xf32> to vector<128xf32>
    %12 = vector.shape_cast %11 : vector<128xf32> to vector<128x1xf32>
    %13 = vector.broadcast %12 : vector<128x1xf32> to vector<128x128xf32>
    %14 = arith.subf %9, %13 : vector<128x128xf32>
    %15 = math.exp %14 : vector<128x128xf32>
    %cst_8 = arith.constant dense<0.000000e+00> : vector<128xf32>
    %16 = vector.multi_reduction <add>, %15, %cst_8 [1] : vector<128x128xf32> to vector<128xf32>
    %17 = vector.shape_cast %16 : vector<128xf32> to vector<128x1xf32>
    %18 = math.log %17 : vector<128x1xf32>
    %19 = arith.addf %18, %12 : vector<128x1xf32>
    %20 = vector.broadcast %1 : vector<1x128xi32> to vector<128x128xi32>
    %21 = arith.cmpi eq, %2, %20 : vector<128x128xi32>
    %22 = arith.extui %21 : vector<128x128xi1> to vector<128x128xi32>
    %23 = arith.sitofp %22 : vector<128x128xi32> to vector<128x128xf32>
    %24 = tpu.transpose %23, [1, 0] : vector<128x128xf32> -> vector<128x128xf32>
    %25 = arith.mulf %9, %24 : vector<128x128xf32>
    %cst_9 = arith.constant dense<0.000000e+00> : vector<128xf32>
    %26 = vector.multi_reduction <add>, %25, %cst_9 [1] : vector<128x128xf32> to vector<128xf32>
    %27 = vector.shape_cast %26 : vector<128xf32> to vector<128x1xf32>
    %28 = arith.subf %19, %27 : vector<128x1xf32>
    %29 = tpu.iota {dimensions = array<i32: 0>} : vector<128x1xi32>
    %c128_i32 = arith.constant 128 : i32
    %30 = arith.muli %arg0, %c128_i32 : i32
    %31 = vector.broadcast %30 : i32 to vector<128x1xi32>
    %32 = arith.addi %31, %29 : vector<128x1xi32>
    %c16_i32 = arith.constant 16 : i32
    %33 = vector.broadcast %c16_i32 : i32 to vector<128x1xi32>
    %34 = arith.cmpi slt, %32, %33 : vector<128x1xi32>
    %cst_10 = arith.constant 0.000000e+00 : f32
    %35 = vector.broadcast %cst_10 : f32 to vector<128x1xf32>
    %36 = arith.select %34, %28, %35 : vector<128x1xi1>, vector<128x1xf32>
    %37 = vector.shape_cast %36 : vector<128x1xf32> to vector<1x128x1xf32>
    %cst_11 = arith.constant dense<0.000000e+00> : vector<1xf32>
    %38 = vector.multi_reduction <add>, %37, %cst_11 [1, 2] : vector<1x128x1xf32> to vector<1xf32>
    %39 = vector.shape_cast %38 : vector<1xf32> to vector<1x1x1xf32>
    %40 = vector.extract %39[0, 0, 0] : f32 from vector<1x1x1xf32>
    %41 = vector.broadcast %40 : f32 to vector<1x1xf32>
    %c0_12 = arith.constant 0 : index
    %c0_13 = arith.constant 0 : index
    %42 = vector.load %arg5[%c0_12, %c0_13] : memref<1x1xf32, #tpu.memory_space<vmem>>, vector<1x1xf32>
    tpu.vector_store %arg5[%c0_12, %c0_13], %41 {strides = array<i32>} : memref<1x1xf32, #tpu.memory_space<vmem>>, vector<1x1xf32>,
    return
  }
  func.func @transform_0(%arg0: i32) -> (i32, i32) {
    %c0_i32 = arith.constant 0 : i32
    %c0_i32_0 = arith.constant 0 : i32
    return %arg0, %c0_i32 : i32, i32
  }
  func.func @transform_1(%arg0: i32) -> (i32, i32) {
    %c0_i32 = arith.constant 0 : i32
    %c0_i32_0 = arith.constant 0 : i32
    return %arg0, %c0_i32 : i32, i32
  }
  func.func @transform_2(%arg0: i32) -> (i32, i32) {
    %c0_i32 = arith.constant 0 : i32
    %c0_i32_0 = arith.constant 0 : i32
    %c0_i32_1 = arith.constant 0 : i32
    return %c0_i32, %c0_i32_0 : i32, i32
  }
  func.func @transform_3(%arg0: i32) -> (i32, i32) {
    %c0_i32 = arith.constant 0 : i32
    %c0_i32_0 = arith.constant 0 : i32
    return %arg0, %c0_i32 : i32, i32
  }
  func.func @transform_4(%arg0: i32) -> (i32, i32) {
    %c0_i32 = arith.constant 0 : i32
    %c0_i32_0 = arith.constant 0 : i32
    return %arg0, %c0_i32 : i32, i32
  }
}

</mosaic_0001>

<bundles_post_ra>
// kernel: tpu_custom_call.1
= control target key start
LH: loop header
LB: loop body
LE: loop exit
PB: predicated region body
PF: predicated region fallthrough
CT: control target
= control target key end

     0   :  { %10 = vsyncpa [#allocation3], 0  ;;  %s1390_s0 = inlined_call_operand.hbm [shape: s32[1,128], index: 0, kind: input, shape index: {}]   ;;  %s1391_s1 = inlined_call_operand.vmem [shape: s32[1,128], index: 1, kind: input, shape index: {}]   ;;  %s1392_s2 = inlined_call_operand.hbm [shape: f32[128,128], index: 2, kind: input, shape index: {}]   ;;  %s1393_s3 = inlined_call_operand.hbm [shape: f32[128,128], index: 3, kind: output, shape index: {0}]   ;;  %s1394_s4 = inlined_call_operand.hbm [shape: f32[1,1], index: 4, kind: output, shape index: {1}]  }
   0x1   :  { %11 = vsyncpa [#allocation6], 0 }
   0x2   :  { %12 = vsyncpa [#allocation4], 0 }
   0x3   :  { %13 = vsyncpa [#allocation9], 0  ;;  %s1058_s15 = smov [#allocation2]   ;;  %s1059_s17 = smov [#allocation5]  }
   0x4   :  { %s20_s16 = sshll.u32 %s1058_s15, 4  ;;  %s31_s18 = sshll.u32 %s1059_s17, 4  ;;  %s21_s16 = int_to_ptr.vmem [resolvable:$true] %s20_s16  ;;  %s1091_s18 = int_to_ptr.vmem [resolvable:$true] %s31_s18 }
   0x5   :  { %s962_s21 = scalar_lea.hbm %s1390_s0, 16 }
   0x6   :  { %p963_p0 = scmp.ne.s32.totalorder %s1390_s0, %s962_s21  ;;  %p966_p1 = scmp.lt.u32.totalorder %s962_s21, %s1390_s0 }
   0x8   :  { %p968_p2 = pnand %p966_p1, %p963_p0 }
   0xa   :  { %971 = shalt.err (!%p968_p2)
}
   0xb   :  { %s972_s26 = scalar_lea.vmem %s21_s16, 16  ;;  %s976_s27 = scalar_lea.vmem %s21_s16, 32 }
   0xc   :  { %p973_p3 = scmp.ne.s32.totalorder %s21_s16, %s972_s26  ;;  %p977_p4 = scmp.lt.s32.totalorder %s21_s16, %s21_s16 }
   0xd   :  { %p978_p5 = scmp.lt.s32.totalorder %s976_s27, %s972_s26 }
   0xf   :  { %p979_p6 = por %p978_p5, %p977_p4 }
  0x11   :  { %p980_p7 = pnand %p979_p6, %p973_p3 }
  0x13   :  { %983 = shalt.err (!%p980_p7)
}
  0x14   :  { %23 = dma.hbm_to_vmem [thread:$0]  %s1390_s0, 16, %s21_s16, [#allocation3]  }
  0x15   :  { %s984_s6 = scalar_lea.hbm %s1392_s2, 2048 }
  0x16   :  { %p985_p8 = scmp.ne.s32.totalorder %s1392_s2, %s984_s6  ;;  %p988_p9 = scmp.lt.u32.totalorder %s984_s6, %s1392_s2 }
  0x18   :  { %p990_p10 = pnand %p988_p9, %p985_p8 }
  0x1a   :  { %993 = shalt.err (!%p990_p10)
}
  0x1b   :  { %s994_s11 = scalar_lea.vmem %s1091_s18, 2048  ;;  %p999_p12 = scmp.lt.s32.totalorder %s1091_s18, %s1091_s18 }
  0x1c   :  { %p995_p11 = scmp.ne.s32.totalorder %s1091_s18, %s994_s11  ;;  %p1000_p13 = scmp.lt.s32.totalorder %s994_s11, %s994_s11 }
  0x1e   :  { %p1001_p0 = por %p1000_p13, %p999_p12 }
  0x20   :  { %p1002_p1 = pnand %p1001_p0, %p995_p11 }
  0x22   :  { %1005 = shalt.err (!%p1002_p1)
}
  0x23   :  { %s1060_s0 = smov 128   ;;  %s1061_s12 = smov 8  }
  0x24   :  { %37 = dma.hbm_to_vmem [thread:$0]  %s1392_s2, 2048, %s1091_s18, [#allocation6], %s1060_s0, %s1060_s0, %s1061_s12  }
  0x25   :  { %1050 = dma.done.wait [#allocation3], 16  }
  0x26   :  { %1051 = vsyncadd [#allocation3], 4294967280 }
  0x27   :  { %1052 = dma.done.wait [#allocation6], 2048  }
  0x28   :  { %1053 = vsyncadd [#allocation6], 4294965248  ;;  %v46_v0 = vlaneseq  ;;  %v1142_v7 = vld [vmem:[#allocation2] ss:$0 sm:$0xff]  ;;  %v115_v8 = vld [vmem:[#allocation5] sm:$0xff]  ;;  %v1063_v59 = vmov 0.0  }
  0x29   :  { %872 = vmatprep.mubr.f32.mxu0 %v115_v8  ;;  %v1062_v9 = vmov 1.0|1.0   ;;  %v123_v13 = vld [vmem:[#allocation5 + $0x40] sm:$0xff]  ;;  %v116_v26 = vld [vmem:[#allocation5 + $0x8] sm:$0xff]  ;;  %v117_v27 = vld [vmem:[#allocation5 + $0x10] sm:$0xff] }
  0x2a   :  { %v1125_v1 = vshrl.u32 %v46_v0, 7  ;;  %884 = vmatprep.mubr.f32.mxu1 %v123_v13  ;;  %v124_v28 = vld [vmem:[#allocation5 + $0x48] sm:$0xff]  ;;  %v125_v29 = vld [vmem:[#allocation5 + $0x50] sm:$0xff]  ;;  %v118_v30 = vld [vmem:[#allocation5 + $0x18] sm:$0xff] }
  0x2b   :  { %v119_v31 = vld [vmem:[#allocation5 + $0x20] sm:$0xff]  ;;  %v126_v32 = vld [vmem:[#allocation5 + $0x58] sm:$0xff]  ;;  %v120_v34 = vld [vmem:[#allocation5 + $0x28] sm:$0xff] }
  0x2c   :  { %v1128_v2 = vadd.s32 8, %v1125_v1  ;;  %v1131_v3 = vadd.s32 16, %v1125_v1  ;;  %v1134_v4 = vadd.s32 24, %v1125_v1  ;;  %v1137_v5 = vadd.s32 32, %v1125_v1  ;;  %v127_v33 = vld [vmem:[#allocation5 + $0x60] sm:$0xff]  ;;  %v121_v35 = vld [vmem:[#allocation5 + $0x30] sm:$0xff] }
  0x2d   :  { %v1140_v6 = vadd.s32 40, %v1125_v1  ;;  %vm67_vm0 = vcmp.eq.s32.totalorder %v1125_v1, %v1142_v7  ;;  %v1162_v11 = vadd.s32 48, %v1125_v1  ;;  %v1165_v12 = vadd.s32 56, %v1125_v1  ;;  %v128_v36 = vld [vmem:[#allocation5 + $0x68] sm:$0xff]  ;;  %v129_v37 = vld [vmem:[#allocation5 + $0x70] sm:$0xff]  ;;  %v122_v38 = vld [vmem:[#allocation5 + $0x38] sm:$0xff] }
  0x2e   :  { %vm68_vm1 = vcmp.eq.s32.totalorder %v1128_v2, %v1142_v7  ;;  %vm69_vm2 = vcmp.eq.s32.totalorder %v1131_v3, %v1142_v7  ;;  %vm70_vm3 = vcmp.eq.s32.totalorder %v1134_v4, %v1142_v7  ;;  %vm71_vm6 = vcmp.eq.s32.totalorder %v1137_v5, %v1142_v7  ;;  %v130_v39 = vld [vmem:[#allocation5 + $0x78] sm:$0xff] }
  0x2f   :  { %vm896_vm4 = vmpackc.low %vm68_vm1, %vm67_vm0  ;;  %vm72_vm7 = vcmp.eq.s32.totalorder %v1140_v6, %v1142_v7  ;;  %vm73_vm9 = vcmp.eq.s32.totalorder %v1162_v11, %v1142_v7  ;;  %vm74_vm10 = vcmp.eq.s32.totalorder %v1165_v12, %v1142_v7  ;;  %v1182_v15 = vadd.s32 64, %v1125_v1  ;;  %v1309_v58 = vld [vmem:[%s1391_s1] ss:$0 sm:$0xff]  ;;  %s1064_s1 = smov [#allocation7]  }
  0x30   :  { %897 = vmatprep.subr.msk.bf16.mxu0 %vm896_vm4, %v1062_v9  ;;  %vm1153_vm5 = vmpackc.low %vm70_vm3, %vm69_vm2  ;;  %928 = vmatprep.subr.msk.bf16.mxu1 %vm896_vm4, %v1062_v9  ;;  %v1185_v16 = vadd.s32 72, %v1125_v1  ;;  %v1208_v18 = vadd.s32 80, %v1125_v1  ;;  %v1211_v19 = vadd.s32 88, %v1125_v1  ;;  %v1234_v21 = vadd.s32 96, %v1125_v1  ;;  %s731_s16 = sshll.u32 %s1064_s1, 4  ;;  %s732_s16 = int_to_ptr.vmem [resolvable:$true] %s731_s16 }
  0x31   :  { %899 = vmatpush3.bf16.msk.msra.mxu0 %vm896_vm4, %v1062_v9  ;;  %vm1172_vm8 = vmpackc.low %vm72_vm7, %vm71_vm6  ;;  %936 = vmatpush3.bf16.msk.msra.mxu1 %vm896_vm4, %v1062_v9  ;;  %vm75_vm12 = vcmp.eq.s32.totalorder %v1182_v15, %v1142_v7  ;;  %v1237_v22 = vadd.s32 104, %v1125_v1  ;;  %v1260_v24 = vadd.s32 112, %v1125_v1  ;;  %v1263_v25 = vadd.s32 120, %v1125_v1  ;;  %s1006_s17 = scalar_lea.vmem %s732_s16, 2048  ;;  %p1011_p3 = scmp.lt.s32.totalorder %s732_s16, %s732_s16 }
  0x32   :  { %901 = vmatprep.subr.msk.bf16.mxu0 %vm1153_vm5, %v1062_v9  ;;  %929 = vmatprep.subr.msk.bf16.mxu1 %vm1153_vm5, %v1062_v9  ;;  %vm1196_vm11 = vmpackc.low %vm74_vm10, %vm73_vm9  ;;  %vm76_vm13 = vcmp.eq.s32.totalorder %v1185_v16, %v1142_v7  ;;  %vm77_vm15 = vcmp.eq.s32.totalorder %v1208_v18, %v1142_v7  ;;  %vm78_vm0 = vcmp.eq.s32.totalorder %v1211_v19, %v1142_v7  ;;  %p1007_p2 = scmp.ne.s32.totalorder %s732_s16, %s1006_s17  ;;  %p1012_p4 = scmp.lt.s32.totalorder %s1006_s17, %s1006_s17 }
  0x33   :  { %vm1222_vm14 = vmpackc.low %vm76_vm13, %vm75_vm12  ;;  %vm79_vm2 = vcmp.eq.s32.totalorder %v1234_v21, %v1142_v7  ;;  %vm80_vm3 = vcmp.eq.s32.totalorder %v1237_v22, %v1142_v7  ;;  %vm82_vm6 = vcmp.eq.s32.totalorder %v1263_v25, %v1142_v7  ;;  %vm489_vm9 = vcmp.eq.s32.totalorder %v1128_v2, %v1309_v58 }
  0x34   :  { %vm1248_vm1 = vmpackc.low %vm78_vm0, %vm77_vm15  ;;  %v793_v61 = vsel %vm489_vm9, 1.0, %v1063_v59  ;;  %vm490_vm10 = vcmp.eq.s32.totalorder %v1131_v3, %v1309_v58  ;;  %vm492_vm12 = vcmp.eq.s32.totalorder %v1137_v5, %v1309_v58  ;;  %vm493_vm13 = vcmp.eq.s32.totalorder %v1140_v6, %v1309_v58  ;;  %p1013_p5 = por %p1012_p4, %p1011_p3 }
  0x35   :  { %903 = vmatpush3.bf16.msk.msra.mxu0 %vm1153_vm5, %v1062_v9  ;;  %937 = vmatpush3.bf16.msk.msra.mxu1 %vm1153_vm5, %v1062_v9  ;;  %vm920_vm4 = vmpackc.low %vm80_vm3, %vm79_vm2  ;;  %vm81_vm5 = vcmp.eq.s32.totalorder %v1260_v24, %v1142_v7  ;;  %v794_v62 = vsel %vm490_vm10, 1.0, %v1063_v59  ;;  %v796_v2 = vsel %vm492_vm12, 1.0, %v1063_v59  ;;  %vm495_vm15 = vcmp.eq.s32.totalorder %v1165_v12, %v1309_v58 }
  0x36   :  { %905 = vmatprep.subr.msk.bf16.mxu0 %vm1172_vm8, %v1062_v9  ;;  %930 = vmatprep.subr.msk.bf16.mxu1 %vm1172_vm8, %v1062_v9  ;;  %vm924_vm7 = vmpackc.low %vm82_vm6, %vm81_vm5  ;;  %v799_v6 = vsel %vm495_vm15, 1.0, %v1063_v59  ;;  %vm496_vm0 = vcmp.eq.s32.totalorder %v1182_v15, %v1309_v58  ;;  %vm498_vm2 = vcmp.eq.s32.totalorder %v1208_v18, %v1309_v58  ;;  %vm499_vm3 = vcmp.eq.s32.totalorder %v1211_v19, %v1309_v58  ;;  %p1014_p6 = pnand %p1013_p5, %p1007_p2 }
  0x37   :  { %v800_v10 = vsel %vm496_vm0, 1.0, %v1063_v59  ;;  %v802_v14 = vsel %vm498_vm2, 1.0, %v1063_v59  ;;  %vm501_vm5 = vcmp.eq.s32.totalorder %v1237_v22, %v1309_v58  ;;  %vm502_vm6 = vcmp.eq.s32.totalorder %v1260_v24, %v1309_v58 }
  0x38   :  { %v805_v19 = vsel %vm501_vm5, 1.0, %v1063_v59 }
  0x39   :  { %907 = vmatpush3.bf16.msk.msra.mxu0 %vm1172_vm8, %v1062_v9  ;;  %938 = vmatpush3.bf16.msk.msra.mxu1 %vm1172_vm8, %v1062_v9  ;;  %vm488_vm8 = vcmp.eq.s32.totalorder %v1125_v1, %v1309_v58 }
  0x3a   :  { %909 = vmatprep.subr.msk.bf16.mxu0 %vm1196_vm11, %v1062_v9  ;;  %931 = vmatprep.subr.msk.bf16.mxu1 %vm1196_vm11, %v1062_v9  ;;  %v792_v60 = vsel %vm488_vm8, 1.0, %v1063_v59  ;;  %vm682_vm8 = vcmask 7168  }
  0x3d   :  { %911 = vmatpush3.bf16.msk.msra.mxu0 %vm1196_vm11, %v1062_v9  ;;  %939 = vmatpush3.bf16.msk.msra.mxu1 %vm1196_vm11, %v1062_v9  ;;  %vm491_vm11 = vcmp.eq.s32.totalorder %v1134_v4, %v1309_v58  ;;  %v797_v4 = vsel %vm493_vm13, 1.0, %v1063_v59 }
  0x3e   :  { %913 = vmatprep.subr.msk.bf16.mxu0 %vm1222_vm14, %v1062_v9  ;;  %932 = vmatprep.subr.msk.bf16.mxu1 %vm1222_vm14, %v1062_v9  ;;  %v795_v0 = vsel %vm491_vm11, 1.0, %v1063_v59 }
  0x41   :  { %915 = vmatpush3.bf16.msk.msra.mxu0 %vm1222_vm14, %v1062_v9  ;;  %940 = vmatpush3.bf16.msk.msra.mxu1 %vm1222_vm14, %v1062_v9  ;;  %vm494_vm14 = vcmp.eq.s32.totalorder %v1162_v11, %v1309_v58 }
  0x42   :  { %917 = vmatprep.subr.msk.bf16.mxu0 %vm1248_vm1, %v1062_v9  ;;  %933 = vmatprep.subr.msk.bf16.mxu1 %vm1248_vm1, %v1062_v9  ;;  %v798_v5 = vsel %vm494_vm14, 1.0, %v1063_v59 }
  0x45   :  { %919 = vmatpush3.bf16.msk.msra.mxu0 %vm1248_vm1, %v1062_v9  ;;  %941 = vmatpush3.bf16.msk.msra.mxu1 %vm1248_vm1, %v1062_v9  ;;  %vm497_vm1 = vcmp.eq.s32.totalorder %v1185_v16, %v1309_v58  ;;  %v803_v16 = vsel %vm499_vm3, 1.0, %v1063_v59 }
  0x46   :  { %921 = vmatprep.subr.msk.bf16.mxu0 %vm920_vm4, %v1062_v9  ;;  %934 = vmatprep.subr.msk.bf16.mxu1 %vm920_vm4, %v1062_v9  ;;  %v801_v12 = vsel %vm497_vm1, 1.0, %v1063_v59 }
  0x49   :  { %923 = vmatpush3.bf16.msk.msra.mxu0 %vm920_vm4, %v1062_v9  ;;  %942 = vmatpush3.bf16.msk.msra.mxu1 %vm920_vm4, %v1062_v9  ;;  %vm500_vm4 = vcmp.eq.s32.totalorder %v1234_v21, %v1309_v58  ;;  %v806_v21 = vsel %vm502_vm6, 1.0, %v1063_v59 }
  0x4a   :  { %925 = vmatprep.subr.msk.bf16.mxu0 %vm924_vm7, %v1062_v9  ;;  %935 = vmatprep.subr.msk.bf16.mxu1 %vm924_vm7, %v1062_v9  ;;  %v804_v18 = vsel %vm500_vm4, 1.0, %v1063_v59 }
  0x4d   :  { %927 = vmatpush3.bf16.msk.msra.mxu0 %vm924_vm7, %v1062_v9  ;;  %943 = vmatpush3.bf16.msk.msra.mxu1 %vm924_vm7, %v1062_v9  ;;  %vm503_vm7 = vcmp.eq.s32.totalorder %v1263_v25, %v1309_v58 }
  0x4e   :  { %v807_v22 = vsel %vm503_vm7, 1.0, %v1063_v59 }
  0x50   :  { %873 = vmatmul.mubr.f32.vlgmr.msra.gmra.mrb[0].mxu0 %v116_v26  ;;  %885 = vmatmul.mubr.f32.vlgmr.msra.gmra.mrb[0].mxu1 %v124_v28 }
  0x51   :  { %875 = vmatprep.mubr.f32.mxu0 %v117_v27  ;;  %887 = vmatprep.mubr.f32.mxu1 %v125_v29 }
  0x54   :  { %876 = vmatmul.mubr.f32.gmra.mrb[2].mxu0 %v118_v30  ;;  %888 = vmatmul.mubr.f32.gmra.mrb[2].mxu1 %v126_v32 }
  0x55   :  { %878 = vmatprep.mubr.f32.mxu0 %v119_v31  ;;  %890 = vmatprep.mubr.f32.mxu1 %v127_v33 }
  0x58   :  { %879 = vmatmul.mubr.f32.gmra.mrb[4].mxu0 %v120_v34  ;;  %891 = vmatmul.mubr.f32.gmra.mrb[4].mxu1 %v128_v36 }
  0x59   :  { %881 = vmatprep.mubr.f32.mxu0 %v121_v35  ;;  %893 = vmatprep.mubr.f32.mxu1 %v129_v37 }
  0x5c   :  { %882 = vmatmul.mubr.f32.gmra.mrb[6].mxu0 %v122_v38  ;;  %894 = vmatmul.mubr.f32.gmra.mrb[6].mxu1 %v130_v39 }
 0x123   :  { %v874_v40 = vpop.f32.mrb[0].mxu0  ;;  %v886_v42 = vpop.f32.mrb[0].mxu1 }
 0x124   :  { %v197_v41 = vpop.f32.mrb[1].mxu0  ;;  %v237_v43 = vpop.f32.mrb[1].mxu1 }
 0x125   :  { %276 = vxpose.xlu0.b32.start [1/16] %v197_v41, 128 }
 0x127   :  { %v877_v44 = vpop.f32.mrb[2].mxu0  ;;  %v889_v46 = vpop.f32.mrb[2].mxu1 }
 0x128   :  { %v207_v45 = vpop.f32.mrb[3].mxu0  ;;  %v247_v47 = vpop.f32.mrb[3].mxu1 }
 0x129   :  { %277 = vxpose.xlu0.b32.cont [2/16] %v874_v40, 128 }
 0x12b   :  { %v880_v48 = vpop.f32.mrb[4].mxu0  ;;  %v892_v50 = vpop.f32.mrb[4].mxu1 }
 0x12c   :  { %v217_v49 = vpop.f32.mrb[5].mxu0  ;;  %v257_v51 = vpop.f32.mrb[5].mxu1 }
 0x12d   :  { %278 = vxpose.xlu0.b32.cont [3/16] %v207_v45, 128 }
 0x12f   :  { %v883_v52 = vpop.f32.mrb[6].mxu0  ;;  %v895_v54 = vpop.f32.mrb[6].mxu1 }
 0x130   :  { %v227_v53 = vpop.f32.mrb[7].mxu0  ;;  %v267_v55 = vpop.f32.mrb[7].mxu1 }
 0x131   :  { %279 = vxpose.xlu0.b32.cont [4/16] %v877_v44, 128 }
 0x135   :  { %280 = vxpose.xlu0.b32.cont [5/16] %v217_v49, 128 }
 0x139   :  { %281 = vxpose.xlu0.b32.cont [6/16] %v880_v48, 128 }
 0x13d   :  { %282 = vxpose.xlu0.b32.cont [7/16] %v227_v53, 128 }
 0x141   :  { %283 = vxpose.xlu0.b32.cont [8/16] %v883_v52, 128 }
 0x145   :  { %284 = vxpose.xlu0.b32.cont [9/16] %v237_v43, 128 }
 0x149   :  { %285 = vxpose.xlu0.b32.cont [10/16] %v886_v42, 128 }
 0x14d   :  { %286 = vxpose.xlu0.b32.cont [11/16] %v247_v47, 128 }
 0x151   :  { %287 = vxpose.xlu0.b32.cont [12/16] %v889_v46, 128 }
 0x155   :  { %288 = vxpose.xlu0.b32.cont [13/16] %v257_v51, 128 }
 0x159   :  { %289 = vxpose.xlu0.b32.cont [14/16] %v892_v50, 128 }
 0x15d   :  { %290 = vxpose.xlu0.b32.cont [15/16] %v267_v55, 128 }
 0x161   :  { %291 = vxpose.xlu0.b32.end [16/16] %v895_v54, 128 }
 0x1a5   :  { %v1298_v56 = vpop.trf.xlu0 }
 0x1a6   :  { %308 = vst [vmem:[#allocation7] sm:$0xff] %v1298_v56  ;;  %324 = vmax.xlane.f32.xlu1 %v1298_v56 }
 0x1a9   :  { %v1302_v57 = vpop.trf.xlu0 }
 0x1aa   :  { %309 = vst [vmem:[#allocation7 + $0x8] sm:$0xff] %v1302_v57  ;;  %326 = vmax.xlane.f32.xlu1 %v1302_v57 }
 0x1ad   :  { %v294_v63 = vpop.trf.xlu0 }
 0x1ae   :  { %310 = vst [vmem:[#allocation7 + $0x10] sm:$0xff] %v294_v63 }
 0x1b1   :  { %v295_v1 = vpop.trf.xlu0 }
 0x1b2   :  { %311 = vst [vmem:[#allocation7 + $0x18] sm:$0xff] %v295_v1 }
 0x1b5   :  { %v296_v3 = vpop.trf.xlu0 }
 0x1b6   :  { %312 = vst [vmem:[#allocation7 + $0x20] sm:$0xff] %v296_v3 }
 0x1b9   :  { %v297_v7 = vpop.trf.xlu0 }
 0x1ba   :  { %313 = vst [vmem:[#allocation7 + $0x28] sm:$0xff] %v297_v7 }
 0x1bd   :  { %v298_v8 = vpop.trf.xlu0 }
 0x1be   :  { %314 = vst [vmem:[#allocation7 + $0x30] sm:$0xff] %v298_v8 }
 0x1c1   :  { %v299_v9 = vpop.trf.xlu0 }
 0x1c2   :  { %315 = vst [vmem:[#allocation7 + $0x38] sm:$0xff] %v299_v9 }
 0x1c5   :  { %v300_v11 = vpop.trf.xlu0 }
 0x1c6   :  { %316 = vst [vmem:[#allocation7 + $0x40] sm:$0xff] %v300_v11 }
 0x1c9   :  { %v301_v13 = vpop.trf.xlu0 }
 0x1ca   :  { %317 = vst [vmem:[#allocation7 + $0x48] sm:$0xff] %v301_v13 }
 0x1cd   :  { %v302_v15 = vpop.trf.xlu0 }
 0x1ce   :  { %318 = vst [vmem:[#allocation7 + $0x50] sm:$0xff] %v302_v15 }
 0x1d1   :  { %v303_v17 = vpop.trf.xlu0 }
 0x1d2   :  { %319 = vst [vmem:[#allocation7 + $0x58] sm:$0xff] %v303_v17 }
 0x1d5   :  { %v304_v20 = vpop.trf.xlu0 }
 0x1d6   :  { %320 = vst [vmem:[#allocation7 + $0x60] sm:$0xff] %v304_v20 }
 0x1d9   :  { %v305_v23 = vpop.trf.xlu0 }
 0x1da   :  { %321 = vst [vmem:[#allocation7 + $0x68] sm:$0xff] %v305_v23 }
 0x1dd   :  { %536 = vxpose.xlu1.b32.start [1/16] (narrow) %v792_v60, 16  ;;  %v306_v26 = vpop.trf.xlu0 }
 0x1de   :  { %322 = vst [vmem:[#allocation7 + $0x70] sm:$0xff] %v306_v26 }
 0x1e1   :  { %537 = vxpose.xlu1.b32.cont [2/16] (narrow) %v793_v61, 16  ;;  %v307_v27 = vpop.trf.xlu0 }
 0x1e2   :  { %323 = vst [vmem:[#allocation7 + $0x78] sm:$0xff] %v307_v27 }
 0x1e5   :  { %538 = vxpose.xlu1.b32.cont [3/16] (narrow) %v794_v62, 16 }
 0x1e9   :  { %539 = vxpose.xlu1.b32.cont [4/16] (narrow) %v795_v0, 16 }
 0x1ed   :  { %540 = vxpose.xlu1.b32.cont [5/16] (narrow) %v796_v2, 16 }
 0x1f1   :  { %541 = vxpose.xlu1.b32.cont [6/16] (narrow) %v797_v4, 16 }
 0x1f5   :  { %542 = vxpose.xlu1.b32.cont [7/16] (narrow) %v798_v5, 16 }
 0x1f9   :  { %543 = vxpose.xlu1.b32.cont [8/16] (narrow) %v799_v6, 16 }
 0x1fd   :  { %544 = vxpose.xlu1.b32.cont [9/16] (narrow) %v800_v10, 16 }
 0x201   :  { %545 = vxpose.xlu1.b32.cont [10/16] (narrow) %v801_v12, 16 }
 0x205   :  { %546 = vxpose.xlu1.b32.cont [11/16] (narrow) %v802_v14, 16 }
 0x209   :  { %547 = vxpose.xlu1.b32.cont [12/16] (narrow) %v803_v16, 16 }
 0x20d   :  { %548 = vxpose.xlu1.b32.cont [13/16] (narrow) %v804_v18, 16 }
 0x211   :  { %549 = vxpose.xlu1.b32.cont [14/16] (narrow) %v805_v19, 16 }
 0x215   :  { %550 = vxpose.xlu1.b32.cont [15/16] (narrow) %v806_v21, 16 }
 0x219   :  { %551 = vxpose.xlu1.b32.end [16/16] (narrow) %v807_v22, 16 }
 0x233   :  { %v325_v28 = vpop.xlane.xlu1 %324 }
 0x234   :  { %v356_v29 = vsub.f32 %v1298_v56, %v325_v28 }
 0x236   :  { %v372_v24 = vmul.f32 1.442695, %v356_v29 }
 0x237   :  { %v327_v30 = vpop.xlane.xlu1 %326 }
 0x238   :  { %954 = vpow2.f32 %v372_v24  ;;  %v357_v31 = vsub.f32 %v1302_v57, %v327_v30 }
 0x23a   :  { %v374_v32 = vmul.f32 1.442695, %v357_v31 }
 0x23c   :  { %956 = vpow2.f32 %v374_v32 }
 0x242   :  { %v955_v33 = vpop.eup %954 }
 0x243   :  { %404 = vadd.xlane.f32.xlu0 %v955_v33 }
 0x246   :  { %v957_v25 = vpop.eup %956 }
 0x247   :  { %406 = vadd.xlane.f32.xlu0 %v957_v25 }
 0x25d   :  { %v552_v34 = vpop.trf.xlu1 }
 0x25e   :  { %v568_v35 = vmul.f32 %v552_v34, %v1298_v56 }
 0x260   :  { %584 = vadd.xlane.f32.xlu0 %v568_v35 }
 0x261   :  { %v553_v36 = vpop.trf.xlu1 }
 0x262   :  { %v569_v37 = vmul.f32 %v553_v36, %v1302_v57 }
 0x264   :  { %586 = vadd.xlane.f32.xlu0 %v569_v37 }
 0x2d0   :  { %v405_v38 = vpop.xlane.xlu0 %404 }
 0x2d1   :  { %958 = vlog2.f32 %v405_v38 }
 0x2d4   :  { %v407_v39 = vpop.xlane.xlu0 %406 }
 0x2d5   :  { %960 = vlog2.f32 %v407_v39 }
 0x2db   :  { %v959_v40 = vpop.eup %958 }
 0x2dc   :  { %v437_v42 = vmul.f32 0.6931472, %v959_v40 }
 0x2de   :  { %v468_v45 = vadd.f32 %v437_v42, %v325_v28 }
 0x2df   :  { %v961_v41 = vpop.eup %960 }
 0x2e0   :  { %v439_v43 = vmul.f32 0.6931472, %v961_v41 }
 0x2e2   :  { %v469_v47 = vadd.f32 %v439_v43, %v327_v30 }
 0x2ed   :  { %v585_v44 = vpop.xlane.xlu0 %584 }
 0x2ee   :  { %v616_v46 = vsub.f32 %v468_v45, %v585_v44 }
 0x2f0   :  { %v683_v50 = vsel %vm682_vm8, %v616_v46, 0.0 }
 0x2f1   :  { %v587_v48 = vpop.xlane.xlu0 %586 }
 0x2f2   :  { %v617_v49 = vsub.f32 %v469_v47, %v587_v48 }
 0x2f4   :  { %v684_v51 = vsel %vm682_vm8, %v617_v49, 0.0 }
 0x2f5   :  { %v685_v52 = vadd.f32 %v684_v51, %v683_v50 }
 0x2f7   :  { %714 = vadd.xlane.f32.xlu1 %v685_v52 }
 0x2f8   :  { %1017 = shalt.err (!%p1014_p6)
}
 0x2f9   :  { %s1018_s20 = scalar_lea.hbm %s1393_s3, 2048 }
 0x2fa   :  { %p1019_p7 = scmp.ne.s32.totalorder %s1393_s3, %s1018_s20  ;;  %p1022_p8 = scmp.lt.u32.totalorder %s1018_s20, %s1393_s3 }
 0x2fc   :  { %p1024_p9 = pnand %p1022_p8, %p1019_p7 }
 0x2fe   :  { %1027 = shalt.err (!%p1024_p9)
}
 0x2ff   :  { %737 = dma.vmem_to_hbm [thread:$0]  %s732_s16, 2048, %s1393_s3, [#allocation4], %s1060_s0, %s1060_s0, %s1061_s12   ;;  %vm724_vm9 = vcmask 0  }
 0x300   :  { %s1065_s27 = smov [#allocation8]  }
 0x301   :  { %s744_s28 = sshll.u32 %s1065_s27, 4  ;;  %s745_s28 = int_to_ptr.vmem [resolvable:$true] %s744_s28 }
 0x302   :  { %s1028_s30 = scalar_lea.vmem %s745_s28, 16  ;;  %s1032_s5 = scalar_lea.vmem %s745_s28, 32 }
 0x303   :  { %p1029_p10 = scmp.ne.s32.totalorder %s745_s28, %s1028_s30  ;;  %p1033_p11 = scmp.lt.s32.totalorder %s745_s28, %s745_s28 }
 0x304   :  { %p1034_p12 = scmp.lt.s32.totalorder %s1032_s5, %s1028_s30 }
 0x306   :  { %p1035_p13 = por %p1034_p12, %p1033_p11 }
 0x308   :  { %p1036_p0 = pnand %p1035_p13, %p1029_p10 }
 0x384   :  { %v715_v53 = vpop.xlane.xlu1 %714 }
 0x385   :  { %v716_v54 = vrot.slane %v715_v53, 4 }
 0x387   :  { %v717_v55 = vadd.f32 %v716_v54, %v715_v53 }
 0x389   :  { %v718_v56 = vrot.slane %v717_v55, 2 }
 0x38b   :  { %v719_v57 = vadd.f32 %v718_v56, %v717_v55 }
 0x38d   :  { %v720_v58 = vrot.slane %v719_v57, 1 }
 0x38f   :  { %v721_v59 = vadd.f32 %v720_v58, %v719_v57 }
 0x391   :  { %944 = vpush %v721_v59 }
 0x3c2   :  { %s945_s29 = spop %944 }
 0x3c3   :  { %v723_v60 = vstv %s945_s29 }
 0x3c4   :  { %725 = vst.msk [vmem:[#allocation8] sm:$0x1] %vm724_vm9, %v723_v60 }
 0x3c5   :  { %1039 = shalt.err (!%p1036_p0)
}
 0x3c6   :  { %s1040_s7 = scalar_lea.hbm %s1394_s4, 16 }
 0x3c7   :  { %p1041_p1 = scmp.ne.s32.totalorder %s1394_s4, %s1040_s7  ;;  %p1044_p2 = scmp.lt.u32.totalorder %s1040_s7, %s1394_s4 }
 0x3c9   :  { %p1046_p3 = pnand %p1044_p2, %p1041_p1 }
 0x3cb   :  { %1049 = shalt.err (!%p1046_p3)
}
 0x3cc   :  { %747 = dma.vmem_to_hbm [thread:$0]  %s745_s28, 16, %s1394_s4, [#allocation9]  }
 0x3cd   :  { %1054 = dma.done.wait [#allocation4], 2048  }
 0x3ce   :  { %1055 = vsyncadd [#allocation4], 4294965248 }
 0x3cf   :  { %1056 = dma.done.wait [#allocation9], 16  }
 0x3d0   :  { %1057 = vsyncadd [#allocation9], 4294967280 }
 0x3d1   :  { %754 = vsyncpa [#allocation3], 1 }
 0x3d2   :  { %755 = vsyncpa [#allocation6], 1 }
 0x3d3   :  { %756 = vsyncpa [#allocation4], 1 }
 0x3d4   :  { %757 = vsyncpa [#allocation9], 1 }

</bundles_post_ra>
